<compile_context>
chip_gen: v5e
topology: v5e:2x2
jax: 0.10.0
libtpu: 0.0.40
codegen_flags: <defaults>
</compile_context>

<pallas_src>
import math

import jax
import jax.numpy as jnp
import numpy as np
from jax.experimental import pallas as pl
from jax.experimental.pallas import tpu as pltpu


def _matmul_bn_sig_kernel(p_ref, w_ref, scale_ref, bias_ref, o_ref):
    """One (image, spatial-tile) per grid step.

    p_ref     : (1, Kpad, tS)    compute dtype — im2col patches, spatial on lanes
    w_ref     : (Cout_p, Kpad)   compute dtype — raw conv weights (resident)
    scale_ref : (Cout_p, 1)      f32 — gamma / sqrt(var + eps)     (resident)
    bias_ref  : (Cout_p, 1)      f32 — beta - mean * scale          (resident)
    o_ref     : (1, Cout_p, tS)  store dtype — channel-major output (NCHW order)
    """
    # Single MXU matmul: (Cout_p, Kpad) @ (Kpad, tS) with f32 accumulation.
    acc = jnp.dot(w_ref[...], p_ref[0], preferred_element_type=jnp.float32)
    # f32 BN epilogue (per-channel scale/bias broadcast along the lane axis).
    y = acc * scale_ref[...] + bias_ref[...]
    # Exact sigmoid; exp runs on the EUP.
    o_ref[0] = (1.0 / (1.0 + jnp.exp(-y))).astype(o_ref.dtype)


def conv_bn_sig(x_nchw, weight_oihw, gamma, beta, running_mean, running_var,
                *, stride=1, padding=0, dilation=1, eps=1e-5,
                compute_dtype=jnp.bfloat16, max_spatial_tile=4096):
    """Forward of _ConvBNSig (Conv2d bias=False -> BatchNorm2d eval -> Sigmoid).

    x_nchw      : (N, Cin, H, W)      float32
    weight_oihw : (Cout, Cin, KH, KW) float32
    returns     : (N, Cout, Ho, Wo)   float32
    """
    N, Cin, H, W = x_nchw.shape
    Cout, Cin_w, KH, KW = weight_oihw.shape
    assert Cin_w == Cin

    Ho = (H + 2 * padding - dilation * (KH - 1) - 1) // stride + 1
    Wo = (W + 2 * padding - dilation * (KW - 1) - 1) // stride + 1
    S = Ho * Wo
    K = Cin * KH * KW

    # Lane/sublane-friendly padded sizes.
    Kpad = 8 * pl.cdiv(K, 8)                         # contraction dim (sublanes)
    Cout_p = 8 * pl.cdiv(Cout, 8)                    # output channels (sublanes)
    tS = min(128 * pl.cdiv(S, 128), max_spatial_tile)  # spatial tile (lanes)
    Spad = tS * pl.cdiv(S, tS)
    n_s_tiles = Spad // tS

    # ---- wrapper-side im2col (plain XLA; halo-free spatial tiles in the kernel) ----
    x_c = x_nchw.astype(compute_dtype)
    if padding:
        x_c = jnp.pad(x_c, ((0, 0), (0, 0), (padding, padding), (padding, padding)))
    taps = []
    for kh in range(KH):
        h0 = kh * dilation
        h1 = h0 + stride * (Ho - 1) + 1
        for kw in range(KW):
            w0 = kw * dilation
            w1 = w0 + stride * (Wo - 1) + 1
            taps.append(x_c[:, :, h0:h1:stride, w0:w1:stride])   # (N, Cin, Ho, Wo)
    patches = jnp.stack(taps, axis=2)                # (N, Cin, KH*KW, Ho, Wo)
    patches = patches.reshape(N, K, S)               # k = ci*KH*KW + kh*KW + kw
    patches = jnp.pad(patches, ((0, 0), (0, Kpad - K), (0, Spad - S)))

    # ---- raw weights (compute dtype) + BN folded into an f32 (scale, bias) pair ----
    w2 = weight_oihw.reshape(Cout, K)                # same (ci, kh, kw) ordering
    w2 = jnp.pad(w2, ((0, Cout_p - Cout), (0, Kpad - K))).astype(compute_dtype)
    scale = (gamma / jnp.sqrt(running_var + eps)).astype(jnp.float32)    # (Cout,)
    bias = (beta - running_mean * scale).astype(jnp.float32)             # (Cout,)
    scale_p = jnp.pad(scale, (0, Cout_p - Cout)).reshape(Cout_p, 1)
    bias_p = jnp.pad(bias, (0, Cout_p - Cout)).reshape(Cout_p, 1)

    store_dtype = compute_dtype

    # Explicit VMEM budget: double-buffered patch/output tiles + resident operands
    # (kept well under v7x's 64 MiB; generous headroom for temporaries).
    csz = jnp.dtype(compute_dtype).itemsize
    osz = jnp.dtype(store_dtype).itemsize
    tile_bytes = 2 * (Kpad * tS * csz + Cout_p * tS * osz)
    resident_bytes = Cout_p * Kpad * csz + 2 * Cout_p * 128 * 4
    vmem_limit = int(min(100 * 2 ** 20,
                         max(8 * 2 ** 20, 4 * (tile_bytes + resident_bytes))))

    out = pl.pallas_call(
        _matmul_bn_sig_kernel,
        out_shape=jax.ShapeDtypeStruct((N, Cout_p, Spad), store_dtype),
        grid_spec=pltpu.PrefetchScalarGridSpec(
            num_scalar_prefetch=0,
            grid=(N, n_s_tiles),
            in_specs=[
                pl.BlockSpec((1, Kpad, tS), lambda n, s: (n, 0, s)),
                pl.BlockSpec((Cout_p, Kpad), lambda n, s: (0, 0)),   # resident
                pl.BlockSpec((Cout_p, 1), lambda n, s: (0, 0)),      # resident
                pl.BlockSpec((Cout_p, 1), lambda n, s: (0, 0)),      # resident
            ],
            out_specs=pl.BlockSpec((1, Cout_p, tS), lambda n, s: (n, 0, s)),
        ),
        compiler_params=pltpu.CompilerParams(
            dimension_semantics=("parallel", "parallel"),
            vmem_limit_bytes=vmem_limit),
    )(patches, w2, scale_p, bias_p)

    # Channel-major output already matches NCHW: drop padding, reshape, upcast.
    out = out[:, :Cout, :S].reshape(N, Cout, Ho, Wo)
    return out.astype(jnp.float32)


def _reference(x, w, gamma, beta, mean, var, *, stride=1, padding=0, dilation=1,
               eps=1e-5):
    y = jax.lax.conv_general_dilated(
        x, w, window_strides=(stride, stride),
        padding=[(padding, padding), (padding, padding)],
        rhs_dilation=(dilation, dilation),
        dimension_numbers=("NCHW", "OIHW", "NCHW"))
    scale = gamma / jnp.sqrt(var + eps)
    shift = beta - mean * scale
    return jax.nn.sigmoid(y * scale[None, :, None, None]
                          + shift[None, :, None, None])


if __name__ == "__main__":
    key = jax.random.PRNGKey(0)
    k_x, k_w, k_g, k_b, k_m, k_v = jax.random.split(key, 6)

    N, Cin, H, W = 2, 4, 16, 16
    Cout, KH, KW = 8, 3, 3

    x = jax.random.normal(k_x, (N, Cin, H, W), jnp.float32)

    fan_in = Cin * KH * KW
    bound = 1.0 / math.sqrt(fan_in)
    weight = jax.random.uniform(k_w, (Cout, Cin, KH, KW), jnp.float32,
                                minval=-bound, maxval=bound)
    gamma = 1.0 + 0.1 * jax.random.normal(k_g, (Cout,), jnp.float32)
    beta = 0.1 * jax.random.normal(k_b, (Cout,), jnp.float32)
    running_mean = 0.1 * jax.random.normal(k_m, (Cout,), jnp.float32)
    running_var = 1.0 + 0.1 * jax.random.uniform(k_v, (Cout,), jnp.float32)

    ref = _reference(x, weight, gamma, beta, running_mean, running_var)

    # f32 compute path (exact epilogue) — tight check.
    out_f32 = jax.block_until_ready(
        conv_bn_sig(x, weight, gamma, beta, running_mean, running_var,
                    compute_dtype=jnp.float32))
    np.testing.assert_allclose(np.asarray(out_f32), np.asarray(ref),
                               rtol=2e-3, atol=2e-3)

    # Default bf16 path (bf16 operands + bf16 store, f32 accumulation/epilogue).
    out_bf16 = jax.block_until_ready(
        conv_bn_sig(x, weight, gamma, beta, running_mean, running_var))
    np.testing.assert_allclose(np.asarray(out_bf16), np.asarray(ref),
                               rtol=2e-2, atol=2e-2)

    print("KERNEL_OK")
</pallas_src>

<mosaic_0001>
module attributes {stable_mosaic.version = 11 : i64} {
  func.func @_matmul_bn_sig_kernel(%arg0: i32, %arg1: i32, %arg2: memref<1x40x256xf32, #tpu.memory_space<vmem>>, %arg3: memref<8x40xf32, #tpu.memory_space<vmem>>, %arg4: memref<8x1xf32, #tpu.memory_space<vmem>>, %arg5: memref<8x1xf32, #tpu.memory_space<vmem>>, %arg6: memref<1x8x256xf32, #tpu.memory_space<vmem>>) attributes {dimension_semantics = [#tpu.dimension_semantics<parallel>, #tpu.dimension_semantics<parallel>], iteration_bounds = array<i64: 2, 1>, scalar_prefetch = 0 : i64, scratch_operands = 0 : i64, tpu.core_type = #tpu.core_type<tc>, window_params = [{transform_indices = @transform_0, window_bounds = array<i64: 1, 40, 256>}, {pipeline_mode = #tpu.pipeline_mode<synchronous>, transform_indices = @transform_1, window_bounds = array<i64: 8, 40>}, {pipeline_mode = #tpu.pipeline_mode<synchronous>, transform_indices = @transform_2, window_bounds = array<i64: 8, 1>}, {pipeline_mode = #tpu.pipeline_mode<synchronous>, transform_indices = @transform_3, window_bounds = array<i64: 8, 1>}, {transform_indices = @transform_4, window_bounds = array<i64: 1, 8, 256>}]} {
    %c0 = arith.constant 0 : index
    %c0_0 = arith.constant 0 : index
    %0 = vector.load %arg3[%c0, %c0_0] : memref<8x40xf32, #tpu.memory_space<vmem>>, vector<8x40xf32>
    %c0_1 = arith.constant 0 : index
    %c0_2 = arith.constant 0 : index
    %c0_3 = arith.constant 0 : index
    %1 = vector.load %arg2[%c0_1, %c0_2, %c0_3] : memref<1x40x256xf32, #tpu.memory_space<vmem>>, vector<1x40x256xf32>
    %2 = vector.shape_cast %1 : vector<1x40x256xf32> to vector<40x256xf32>
    %cst = arith.constant dense<0.000000e+00> : vector<8x256xf32>
    %3 = tpu.matmul %0, %2, %cst {dimension_numbers = #tpu.dot_dimension_numbers<[1], [0], [0], [1], [0, 0, 1, 1], [], []>} : vector<8x40xf32>, vector<40x256xf32>, vector<8x256xf32> -> vector<8x256xf32>
    %c0_4 = arith.constant 0 : index
    %c0_5 = arith.constant 0 : index
    %4 = vector.load %arg4[%c0_4, %c0_5] : memref<8x1xf32, #tpu.memory_space<vmem>>, vector<8x1xf32>
    %5 = vector.broadcast %4 : vector<8x1xf32> to vector<8x256xf32>
    %6 = arith.mulf %3, %5 : vector<8x256xf32>
    %c0_6 = arith.constant 0 : index
    %c0_7 = arith.constant 0 : index
    %7 = vector.load %arg5[%c0_6, %c0_7] : memref<8x1xf32, #tpu.memory_space<vmem>>, vector<8x1xf32>
    %8 = vector.broadcast %7 : vector<8x1xf32> to vector<8x256xf32>
    %9 = arith.addf %6, %8 : vector<8x256xf32>
    %cst_8 = arith.constant 0.000000e+00 : f32
    %10 = vector.broadcast %cst_8 : f32 to vector<8x256xf32>
    %11 = arith.subf %10, %9 : vector<8x256xf32>
    %12 = math.exp %11 : vector<8x256xf32>
    %cst_9 = arith.constant 1.000000e+00 : f32
    %13 = vector.broadcast %cst_9 : f32 to vector<8x256xf32>
    %14 = arith.addf %13, %12 : vector<8x256xf32>
    %cst_10 = arith.constant 1.000000e+00 : f32
    %15 = vector.broadcast %cst_10 : f32 to vector<8x256xf32>
    %16 = arith.divf %15, %14 : vector<8x256xf32>
    %c0_11 = arith.constant 0 : index
    %c0_12 = arith.constant 0 : index
    %c0_13 = arith.constant 0 : index
    %17 = vector.load %arg6[%c0_11, %c0_12, %c0_13] : memref<1x8x256xf32, #tpu.memory_space<vmem>>, vector<1x8x256xf32>
    %18 = vector.shape_cast %17 : vector<1x8x256xf32> to vector<8x256xf32>
    %19 = vector.shape_cast %16 : vector<8x256xf32> to vector<1x8x256xf32>
    tpu.vector_store %arg6[%c0_11, %c0_12, %c0_13], %19 {strides = array<i32>} : memref<1x8x256xf32, #tpu.memory_space<vmem>>, vector<1x8x256xf32>,
    return
  }
  func.func @transform_0(%arg0: i32, %arg1: i32) -> (i32, i32, i32) {
    %c0_i32 = arith.constant 0 : i32
    %c0_i32_0 = arith.constant 0 : i32
    return %arg0, %c0_i32, %arg1 : i32, i32, i32
  }
  func.func @transform_1(%arg0: i32, %arg1: i32) -> (i32, i32) {
    %c0_i32 = arith.constant 0 : i32
    %c0_i32_0 = arith.constant 0 : i32
    %c0_i32_1 = arith.constant 0 : i32
    return %c0_i32, %c0_i32_0 : i32, i32
  }
  func.func @transform_2(%arg0: i32, %arg1: i32) -> (i32, i32) {
    %c0_i32 = arith.constant 0 : i32
    %c0_i32_0 = arith.constant 0 : i32
    %c0_i32_1 = arith.constant 0 : i32
    return %c0_i32, %c0_i32_0 : i32, i32
  }
  func.func @transform_3(%arg0: i32, %arg1: i32) -> (i32, i32) {
    %c0_i32 = arith.constant 0 : i32
    %c0_i32_0 = arith.constant 0 : i32
    %c0_i32_1 = arith.constant 0 : i32
    return %c0_i32, %c0_i32_0 : i32, i32
  }
  func.func @transform_4(%arg0: i32, %arg1: i32) -> (i32, i32, i32) {
    %c0_i32 = arith.constant 0 : i32
    %c0_i32_0 = arith.constant 0 : i32
    return %arg0, %c0_i32, %arg1 : i32, i32, i32
  }
}

</mosaic_0001>

<bundles_post_ra>
// kernel: tpu_custom_call.1
= control target key start
LH: loop header
LB: loop body
LE: loop exit
PB: predicated region body
PF: predicated region fallthrough
CT: control target
= control target key end

     0   :  { %9 = vsyncpa [#allocation3], 0  ;;  %s816_s0 = inlined_call_operand.hbm [shape: f32[2,40,256], index: 0, kind: input, shape index: {}]   ;;  %s817_s1 = inlined_call_operand.vmem [shape: f32[8,40], index: 1, kind: input, shape index: {}]   ;;  %s818_s2 = inlined_call_operand.vmem [shape: f32[8,1], index: 2, kind: input, shape index: {}]   ;;  %s819_s3 = inlined_call_operand.vmem [shape: f32[8,1], index: 3, kind: input, shape index: {}]   ;;  %s820_s4 = inlined_call_operand.hbm [shape: f32[2,8,256], index: 4, kind: output, shape index: {}]  }
   0x1   :  { %11 = vsyncpa [#allocation3 + $0x1], 0 }
   0x2   :  { %12 = vsyncpa [#allocation4], 0 }
   0x3   :  { %14 = vsyncpa [#allocation4 + $0x1], 0  ;;  %s686_s15 = smov 0   ;;  %s688_s16 = smov 0  }
   0x4   :  { %s690_s17 = smov 0   ;;  %s692_s18 = smov 0  }
   0x5   :  { %s694_s19 = smov 0   ;;  %s696_s20 = smov 0  }
   0x6 LB: > { %s452_s21 = sadd.s32 4294967295, %s656_s20   ;;  %s453_s22 = sadd.s32 4294967294, %s656_s20   ;;  %s656_s20 = sphi %s696_s20, %s20_s20   ;;  %s652_s19 = sphi %s694_s19, %s829_s19   ;;  %s648_s18 = sphi %s692_s18, %s828_s18   ;;  %s644_s17 = sphi %s690_s17, %s827_s17   ;;  %s640_s16 = sphi %s688_s16, %s826_s16   ;;  %s636_s15 = sphi %s686_s15, %s825_s15  }
   0x7   : > { %s32_s23 = sadd.s32 1, %s652_s19  ;;  %s41_s24 = sadd.s32 1, %s644_s17 }
   0x8   : > { %p34_p0 = scmp.ge.s32.totalorder %s32_s23, 2  ;;  %p48_p1 = scmp.ne.s32.totalorder %s644_s17, %s640_s16 }
   0x9   : > { %p49_p2 = scmp.eq.s32.totalorder %s656_s20, 0  ;;  %p54_p3 = scmp.ne.s32.totalorder %s640_s16, %s636_s15 }
   0xa   : > { %s831_s23 = smov (%p34_p0, %s32_s23), 0  ;;  %p55_p5 = scmp.eq.s32.totalorder %s452_s21, 0 }
   0xb   : > { %p727_p4 = por %p49_p2, %p48_p1  ;;  %s36_s26 = ssub.s32 %s652_s19, %s831_s23 }
   0xc   : > { %p143_p6 = scmp.eq.s32.totalorder %s452_s21, 1  ;;  %p39_p7 = scmp.eq.s32.totalorder %s36_s26, 0 }
   0xd   : > { %p733_p8 = por %p55_p5, %p54_p3  ;;  %p149_p10 = scmp.eq.s32.totalorder %s453_s22, 1 }
   0xe   : > { %p737_p9 = por %p143_p6, %p48_p1  ;;  %p455_p12 = scmp.ge.s32.totalorder %s656_s20, 2 }
   0xf   : > { %s742_s29 = scalar_select %p39_p7, %s644_s17, %s41_s24  }
  0x10   : > { %p744_p11 = por %p149_p10, %p54_p3  ;;  %p482_p13 = scmp.lt.s32.totalorder %s656_s20, 2 }
  0x11   : > { %s178_s5 = sand.u32 1, %s644_s17   ;;  %s468_s7 = smul.u32 80, %s652_s19 }
  0x12   : > { %s467_s6 = smul.u32 80, %s178_s5  ;;  %p475_p0 = pnand %p482_p13, %p727_p4 }
  0x13   : > { %s189_s10 = scalar_lea.hbm %s816_s0, %s468_s7  ;;  %p457_p1 = scmp.ge.s32.totalorder %s656_s20, 1 }
  0x14   : > { %s182_s11 = scalar_lea.vmem [#allocation2], %s467_s6  ;;  %s190_s13 = sshll.u32 %s189_s10, 4  ;;  %s191_s13 = int_to_ptr.hbm [resolvable:$true] %s190_s13 }
  0x15   : > { %s192_s12 = sshll.u32 %s182_s11, 4  ;;  %s179_s14 = scalar_lea.sflag [#allocation3], %s178_s5  ;;  %s193_s12 = int_to_ptr.vmem [resolvable:$true] %s192_s12 }
  0x16   : > { %s658_s21 = smov 256   ;;  %s659_s22 = smov 16  }
  0x17   : > { %477 = dma.hbm_to_vmem [thread:$0]  (!%p475_p0), %s191_s13, 1280, %s193_s12, %s179_s14, %s658_s21, %s658_s21, %s659_s22  }
  0x18   : > { %p200_p2 = scmp.lt.s32.totalorder %s656_s20, 3 }
  0x1a   : > { %p201_p3 = pnand %p457_p1, %p200_p2 }
  0x1b   : > { %s760_s24 = sand.u32 (!%p201_p3), 1, %s640_s16  }
  0x1c   : > { %204 = sbr.rel (%p201_p3) target bundleno = 208 (0xd0), region = 36  ;;  %s207_s26 = scalar_lea.sflag (!%p201_p3), [#allocation3], %s760_s24 }
  0x1d   : > { %s469_s25 = smul.u32 (!%p201_p3), 80, %s760_s24 }
  0x1f   : > { %s210_s6 = scalar_lea.vmem (!%p201_p3), [#allocation2], %s469_s25 }
  0x21   : > { %627 = dma.done.wait (%p733_p8), %s207_s26, 1280  }
  0x22   : > { %629 = vsyncadd (%p733_p8), %s207_s26, 4294966016  ;;  %v660_v0 = vmov 0   ;;  %v247_v1 = vld [vmem:[%s210_s6 + $0x40] sm:$0xff]  ;;  %v248_v2 = vld [vmem:[%s210_s6 + $0x48] sm:$0xff]  ;;  %vm249_vm0 = vcmask 326656   ;;  %s458_s11 = sshll.u32 %s760_s24, 4 }
  0x23   : > { %535 = vset.pattern.permute.xlu0 %v660_v0  ;;  %v245_v3 = vld [vmem:[%s210_s6 + $0x30] sm:$0xff]  ;;  %264 = vmatpush.msra.mxu0 %v247_v1  ;;  %v246_v4 = vld [vmem:[%s210_s6 + $0x38] sm:$0xff]  ;;  %v243_v5 = vld [vmem:[%s210_s6 + $0x20] sm:$0xff]  ;;  %s466_s12 = sshll.u32 %s648_s18, 4  ;;  %s235_s22 = scalar_lea.vmem [#allocation5], %s458_s11 }
  0x24   : > { %284 = vmatpush.msra.mxu1 %v248_v2  ;;  %v244_v6 = vld [vmem:[%s210_s6 + $0x28] sm:$0xff]  ;;  %v293_v7 = vld [vmem:[%s818_s2] sm:$0xff]  ;;  %v242_v9 = vld [vmem:[%s210_s6 + $0x18] sm:$0xff]  ;;  %s363_s21 = scalar_lea.hbm %s820_s4, %s466_s12  ;;  %s365_s25 = sshll.u32 %s235_s22, 4  ;;  %s366_s25 = int_to_ptr.vmem [resolvable:$true] %s365_s25 }
  0x25   : > { %265 = vmatpush.msra.mxu0 %v245_v3  ;;  %296 = vperm.xlu0 %535, %v293_v7   ;;  %v241_v8 = vld [vmem:[%s210_s6 + $0x10] sm:$0xff]  ;;  %v239_v10 = vld [vmem:[%s210_s6] sm:$0xff]  ;;  %v240_v11 = vld [vmem:[%s210_s6 + $0x8] sm:$0xff]  ;;  %s367_s18 = sshll.u32 %s363_s21, 4  ;;  %s350_s26 = scalar_lea.sflag [#allocation4], %s760_s24  ;;  %s368_s18 = int_to_ptr.hbm [resolvable:$true] %s367_s18 }
  0x26   : > { %285 = vmatpush.msra.mxu1 %v246_v4  ;;  %v238_v12 = vld [vmem:[%s817_s1] sm:$0xff]  ;;  %s588_s6 = sshra.s32 %s368_s18, 4  ;;  %s594_s8 = scalar_lea.hbm %s820_s4, 32  ;;  %s589_s6 = int_to_ptr.hbm [resolvable:$true] %s588_s6 }
  0x27   : > { %266 = vmatpush.msra.mxu0 %v243_v5  ;;  %v301_v13 = vld [vmem:[%s819_s3] sm:$0xff]  ;;  %s590_s5 = scalar_lea.hbm %s589_s6, 16  ;;  %p595_p7 = scmp.lt.s32.totalorder %s589_s6, %s820_s4 }
  0x28   : > { %286 = vmatpush.msra.mxu1 %v244_v6  ;;  %p591_p4 = scmp.ne.s32.totalorder %s589_s6, %s590_s5  ;;  %p596_p8 = scmp.lt.s32.totalorder %s594_s8, %s590_s5 }
  0x29   : > { %267 = vmatpush.msra.mxu0 %v241_v8 }
  0x2a   : > { %287 = vmatpush.msra.mxu1 %v242_v9  ;;  %p592_p5 = pnand %p591_p4, %p737_p9  ;;  %p597_p10 = por %p596_p8, %p595_p7 }
  0x2b   : > { %268 = vmatpush.msra.mxu0 %v239_v10 }
  0x2c   : > { %288 = vmatpush.msra.mxu1 %v240_v11  ;;  %459 = vmatmul.msk.f32.vlgmr.msra.gmra.mxu0 %vm249_vm0, %v238_v12  ;;  %p593_p6 = pneg %p592_p5 }
  0x2d   : > { %460 = vmatmul.msk.f32.vlgmr.msra.gmra.mxu1 %vm249_vm0, %v238_v12  ;;  %304 = vperm.xlu0 %535, %v301_v13  }
  0x2e   : > { %p598_p13 = pnand %p597_p10, %p593_p6 }
  0x97   : > { %v297_v14 = vpop.permute.xlu0 %296 }
  0x9f   : > { %v305_v19 = vpop.permute.xlu0 %304 }
  0xa9   : > { %v270_v15 = vpop.f32.mrf.mxu0 }
  0xaa   : > { %v290_v16 = vpop.f32.mrf.mxu1  ;;  %v299_v17 = vmul.f32 %v297_v14, %v270_v15 }
  0xab   : > { %v300_v18 = vmul.f32 %v297_v14, %v290_v16 }
  0xac   : > { %v307_v20 = vadd.f32 %v305_v19, %v299_v17 }
  0xad   : > { %v308_v21 = vadd.f32 %v305_v19, %v300_v18 }
  0xae   : > { %v309_v22 = vsub.f32 0.0, %v307_v20 }
  0xaf   : > { %v310_v23 = vsub.f32 0.0, %v308_v21 }
  0xb0   : > { %v311_v24 = vmul.f32 1.442695, %v309_v22 }
  0xb1   : > { %v313_v25 = vmul.f32 1.442695, %v310_v23 }
  0xb2   : > { %536 = vpow2.f32 %v311_v24 }
  0xb3   : > { %538 = vpow2.f32 %v313_v25 }
  0xb8   : > { %v537_v26 = vpop.eup %536 }
  0xb9   : > { %v539_v27 = vpop.eup %538  ;;  %v315_v28 = vadd.f32 1.0, %v537_v26 }
  0xba   : > { %v316_v29 = vadd.f32 1.0, %v539_v27 }
  0xbb   : > { %540 = vrcp.f32 %v315_v28  ;;  %v328_v36 = vand.u32 2147483648, %v315_v28  ;;  %v326_v38 = vand.u32 2147483647, %v315_v28  ;;  %vm322_vm3 = vweird.f32 %v315_v28 }
  0xbc   : > { %542 = vrcp.f32 %v316_v29  ;;  %v343_v39 = vand.u32 2147483648, %v316_v29  ;;  %v341_v41 = vand.u32 2147483647, %v316_v29  ;;  %vm337_vm5 = vweird.f32 %v316_v29 }
  0xbd   : > { %v329_v43 = vor.u32 1.1754944e-38, %v328_v36  ;;  %vm327_vm6 = vcmp.eq.f32.partialorder %v326_v38, 8.507059e+37 }
  0xbe   : > { %v344_v46 = vor.u32 1.1754944e-38, %v343_v39  ;;  %vm342_vm8 = vcmp.eq.f32.partialorder %v341_v41, 8.507059e+37 }
  0xc1   : > { %v541_v30 = vpop.eup %540 }
  0xc2   : > { %v543_v31 = vpop.eup %542  ;;  %v318_v32 = vmul.f32 %v541_v30, %v315_v28  ;;  %vm323_vm1 = vweird.f32 %v541_v30 }
  0xc3   : > { %v333_v33 = vmul.f32 %v543_v31, %v316_v29  ;;  %vm338_vm2 = vweird.f32 %v543_v31  ;;  %vm324_vm4 = vmor %vm322_vm3, %vm323_vm1 }
  0xc4   : > { %v319_v34 = vsub.f32 1.0, %v318_v32  ;;  %vm339_vm7 = vmor %vm337_vm5, %vm338_vm2 }
  0xc5   : > { %v334_v35 = vsub.f32 1.0, %v333_v33 }
  0xc6   : > { %v320_v37 = vmul.f32 %v541_v30, %v319_v34 }
  0xc7   : > { %v335_v40 = vmul.f32 %v543_v31, %v334_v35 }
  0xc8   : > { %v321_v42 = vadd.f32 %v541_v30, %v320_v37 }
  0xc9   : > { %v336_v44 = vadd.f32 %v543_v31, %v335_v40 }
  0xca   : > { %v325_v45 = vsel %vm324_vm4, %v541_v30, %v321_v42 }
  0xcb   : > { %v330_v47 = vsel %vm327_vm6, %v329_v43, %v325_v45  ;;  %v340_v48 = vsel %vm339_vm7, %v543_v31, %v336_v44 }
  0xcc   : > { %v345_v49 = vsel %vm342_vm8, %v344_v46, %v340_v48  ;;  %347 = vst [vmem:[%s235_s22] sm:$0xff] %v330_v47 }
  0xcd   : > { %348 = vst [vmem:[%s235_s22 + $0x8] sm:$0xff] %v345_v49 }
  0xce   : > { %601 = shalt.err (!%p598_p13)
}
  0xcf   : > { %472 = dma.vmem_to_hbm [thread:$0]  (%p737_p9), %s366_s25, 256, %s368_s18, %s350_s26  }
  0xd0 PF: > { %s379_s24 = sand.u32 1, %s636_s15   ;;  %p479_p0 = pnand %p455_p12, %p744_p11 }
  0xd1   : > { %s380_s11 = scalar_lea.sflag [#allocation4], %s379_s24 }
  0xd2   : > { %p480_p1 = pneg %p479_p0 }
  0xd4   : > { %631 = dma.done.wait (%p480_p1), %s380_s11, 256  }
  0xd5   : > { %633 = vsyncadd (%p480_p1), %s380_s11, 4294967040  ;;  %s20_s20 = sadd.s32 1, %s656_s20   ;;  %s825_s15 = smov %s640_s16 }
  0xd6   : > { %p17_p2 = scmp.ge.s32.totalorder %s20_s20, 4   ;;  %s826_s16 = smov %s644_s17 }
  0xd7   : > { %s827_s17 = smov %s742_s29  ;;  %s828_s18 = smov %s652_s19 }
  0xd8   : > { %s829_s19 = smov %s831_s23  ;;  %19 = sbr.rel (!%p17_p2) target bundleno = 6 (0x6), region = 81 }
  0xdd   :  { %386 = vsyncpa [#allocation3], 1 }
  0xde   :  { %388 = vsyncpa [#allocation3 + $0x1], 1 }
  0xdf   :  { %389 = vsyncpa [#allocation4], 1 }
  0xe0   :  { %391 = vsyncpa [#allocation4 + $0x1], 1 }

</bundles_post_ra>
